<compile_context>
chip_gen: v6e
topology: v6e:2x2x1
jax: 0.10.0
libtpu: 0.0.40
codegen_flags: <defaults>
</compile_context>

<pallas_src>
import functools

import jax
import jax.numpy as jnp
from jax.experimental import pallas as pl
from jax.experimental.pallas import tpu as pltpu


def _channel_attention_kernel(x_ref, w1_ref, b1_ref, w2_ref, b2_ref, o_ref,
                              *, small_hidden: bool):
    """One (tb, W) tile: gate = sigmoid(relu(x@w1+b1) @ w2 + b2); out = x*gate."""
    x = x_ref[...]                                  # native dtype -> fast MXU path for bf16

    # Linear(W -> H) + ReLU.  Wide contraction -> MXU, f32 accumulation.
    h = jnp.dot(x, w1_ref[...], preferred_element_type=jnp.float32)
    h = jnp.maximum(h + b1_ref[...], 0.0)           # b1 already f32 (cast hoisted to wrapper)

    if small_hidden:
        # H <= 8: an MXU dot would waste the array and pay full drain latency;
        # unroll into H VPU broadcast-multiply-adds.  w2/b2 already f32.
        w2 = w2_ref[...]
        logits = b2_ref[...]                        # (1, W), broadcasts over rows
        for k in range(w2_ref.shape[0]):            # static unroll, H is small
            logits = logits + h[:, k:k + 1] * w2[k:k + 1, :]
    else:
        rhs = w2_ref[...]
        # bf16 weights: cast h DOWN so the MXU takes the bf16-in / f32-acc path.
        lhs = h.astype(jnp.bfloat16) if rhs.dtype == jnp.bfloat16 else h
        logits = jnp.dot(lhs, rhs, preferred_element_type=jnp.float32) + b2_ref[...]

    gate = jax.nn.sigmoid(logits)                   # f32 on the EUP
    # einsum('bc,bc->bc') == elementwise multiply; single cast at the store.
    o_ref[...] = (x.astype(jnp.float32) * gate).astype(o_ref.dtype)


def channel_attention(x, w1, b1, w2, b2, *,
                      target_tile_bytes=2 << 20,    # ~2 MiB per streamed buffer
                      min_grid_steps=8,
                      alias_input=False):
    """x: (B, C); w1: (C, H); b1: (H,); w2: (H, C); b2: (C,).  Returns (B, C)."""
    B, C = x.shape
    H = w1.shape[1]
    dtype = x.dtype
    itemsize = jnp.dtype(dtype).itemsize
    sublane = 8 * max(1, 4 // itemsize)             # 8 rows for f32, 16 for bf16

    lane_dense = (C < 128) and (128 % C == 0)
    if lane_dense:
        # Fold F batch rows into the lane axis; make the Linears block-diagonal
        # so every HBM-facing load/store and the elementwise gate are full-lane.
        fold = 128 // C
        b_pad = pl.cdiv(B, fold) * fold
        x_in = x if b_pad == B else jnp.pad(x, ((0, b_pad - B), (0, 0)))
        x_in = x_in.reshape(b_pad // fold, 128)
        w1_in = jnp.kron(jnp.eye(fold, dtype=w1.dtype), w1)        # (128, F*H)
        w2_in = jnp.kron(jnp.eye(fold, dtype=w2.dtype), w2)        # (F*H, 128)
        b1_in = jnp.tile(b1.astype(jnp.float32), fold).reshape(1, fold * H)
        b2_in = jnp.tile(b2.astype(jnp.float32), fold).reshape(1, 128)
        small_hidden = False            # effective hidden = F*H (>= 16 for reduce_rate=1/8)
    else:
        # Fallback: stream plain (tb, C) tiles (lane-dense automatically when
        # C is a multiple of 128; masked stores otherwise -- see TODO above).
        x_in = x
        w1_in = w1
        small_hidden = H <= 8
        w2_in = w2.astype(jnp.float32) if small_hidden else w2     # hoisted cast
        b1_in = b1.astype(jnp.float32).reshape(1, H)
        b2_in = b2.astype(jnp.float32).reshape(1, C)

    R, W = x_in.shape
    row_bytes = W * itemsize

    # --- byte-budgeted batch tile; keep >= min_grid_steps steps when R permits ---
    tb = max(sublane, (target_tile_bytes // row_bytes) // sublane * sublane)
    cap = max(sublane, (pl.cdiv(R, min_grid_steps) // sublane) * sublane)
    tb = min(tb, cap)
    if tb >= R:
        tb = R                                      # full-extent block (always legal)
    grid = (pl.cdiv(R, tb),)

    # --- VMEM budget: x/out double-buffered tiles + resident weights ------------
    def _nbytes(a):
        return a.size * jnp.dtype(a.dtype).itemsize

    weight_bytes = _nbytes(w1_in) + _nbytes(w2_in) + _nbytes(b1_in) + _nbytes(b2_in)
    single_buffer_weights = weight_bytes > (2 << 20)
    wbuf = 1 if single_buffer_weights else 2
    vmem_need = 2 * 2 * tb * W * itemsize + wbuf * weight_bytes
    vmem_limit = int(min(48 << 20, max(32 << 20, int(1.5 * vmem_need))))

    def _resident_spec(shape):
        # Weights/biases stay VMEM-resident across the whole grid.  For very
        # large weight blocks drop the (useless) double buffer.
        if single_buffer_weights:
            return pl.BlockSpec(shape, lambda i: (0, 0), pipeline_mode=pl.Buffered(1))
        return pl.BlockSpec(shape, lambda i: (0, 0))

    cost = pl.CostEstimate(
        flops=4 * B * C * H + 4 * B * C,
        transcendentals=B * C,                      # sigmoid
        bytes_accessed=2 * B * C * itemsize + weight_bytes,
    )

    out = pl.pallas_call(
        functools.partial(_channel_attention_kernel, small_hidden=small_hidden),
        out_shape=jax.ShapeDtypeStruct((R, W), dtype),
        grid=grid,
        in_specs=[
            pl.BlockSpec((tb, W), lambda i: (i, 0)),   # x: streamed, double-buffered
            _resident_spec(w1_in.shape),
            _resident_spec(b1_in.shape),
            _resident_spec(w2_in.shape),
            _resident_spec(b2_in.shape),
        ],
        out_specs=pl.BlockSpec((tb, W), lambda i: (i, 0)),
        compiler_params=pltpu.CompilerParams(
            dimension_semantics=("parallel",),         # megacore shard on v7x
            vmem_limit_bytes=vmem_limit,
        ),
        cost_estimate=cost,
        input_output_aliases={0: 0} if alias_input else {},
    )(x_in, w1_in, b1_in, w2_in, b2_in)

    if lane_dense:
        out = out.reshape(-1, C)
        if out.shape[0] != B:
            out = out[:B]
    return out


def channel_attention_ref(x, w1, b1, w2, b2):
    xf = x.astype(jnp.float32)
    h = jnp.maximum(xf @ w1.astype(jnp.float32) + b1.astype(jnp.float32), 0.0)
    gate = jax.nn.sigmoid(h @ w2.astype(jnp.float32) + b2.astype(jnp.float32))
    return (xf * gate).astype(x.dtype)


def _make_params(c, h, dtype, k0, k1, k2, k3):
    # PyTorch Linear stores (out, in); the kernel uses the transposed (in, out)
    # form so it can do plain x @ W.
    lim1 = 1.0 / (c ** 0.5)
    w1 = jax.random.uniform(k0, (c, h), jnp.float32, -lim1, lim1).astype(dtype)
    b1 = jax.random.uniform(k1, (h,), jnp.float32, -lim1, lim1)
    lim2 = 1.0 / (h ** 0.5)
    w2 = jax.random.uniform(k2, (h, c), jnp.float32, -lim2, lim2).astype(dtype)
    b2 = jax.random.uniform(k3, (c,), jnp.float32, -lim2, lim2)
    return w1, b1, w2, b2


def _check(x, w1, b1, w2, b2, atol, rtol):
    out = jax.block_until_ready(channel_attention(x, w1, b1, w2, b2))
    ref = channel_attention_ref(x, w1, b1, w2, b2)
    assert out.shape == x.shape and out.dtype == x.dtype
    assert jnp.allclose(out.astype(jnp.float32), ref.astype(jnp.float32),
                        atol=atol, rtol=rtol), (x.shape, x.dtype)


if __name__ == "__main__":
    key = jax.random.PRNGKey(0)
    ks = jax.random.split(key, 16)

    # 1) Small case matching the module defaults: C=32, hidden = C//8 = 4.
    #    Lane-dense path (fold 4 rows -> 128 lanes), single grid step.
    C, Hd = 32, int(32 * (1.0 / 8.0))
    w1, b1, w2, b2 = _make_params(C, Hd, jnp.float32, ks[0], ks[1], ks[2], ks[3])
    x = jax.random.normal(ks[4], (8, C), dtype=jnp.float32)
    _check(x, w1, b1, w2, b2, atol=3e-5, rtol=1e-5)

    # 2) Larger batch: lane-dense path with a multi-step grid (byte-budgeted
    #    tiles, >=8 steps, "parallel" semantics for v7x megacore).
    x2 = jax.random.normal(ks[5], (2048, C), dtype=jnp.float32)
    _check(x2, w1, b1, w2, b2, atol=3e-5, rtol=1e-5)

    # 3) C that does not divide 128 (fallback path, small-hidden VPU unroll).
    C3, H3 = 48, int(48 * (1.0 / 8.0))
    w1c, b1c, w2c, b2c = _make_params(C3, H3, jnp.float32, ks[6], ks[7], ks[8], ks[9])
    x3 = jax.random.normal(ks[10], (16, C3), dtype=jnp.float32)
    _check(x3, w1c, b1c, w2c, b2c, atol=3e-5, rtol=1e-5)

    # 4) C that is already a multiple of 128 (fallback path, MXU second dot).
    C4, H4 = 256, int(256 * (1.0 / 8.0))
    w1d, b1d, w2d, b2d = _make_params(C4, H4, jnp.float32, ks[11], ks[12], ks[13], ks[14])
    x4 = jax.random.normal(ks[15], (64, C4), dtype=jnp.float32)
    _check(x4, w1d, b1d, w2d, b2d, atol=3e-5, rtol=1e-5)

    # 5) bf16 activations + weights: lane-dense path, bf16 MXU, 16-row sublane tiles.
    xb = jax.random.normal(ks[5], (512, C), dtype=jnp.bfloat16)
    _check(xb, w1.astype(jnp.bfloat16), b1, w2.astype(jnp.bfloat16), b2,
           atol=5e-2, rtol=5e-2)

    print("KERNEL_OK")
</pallas_src>

<mosaic_0001>
module attributes {stable_mosaic.version = 11 : i64} {
  func.func @_channel_attention_kernel(%arg0: i32, %arg1: memref<2x128xf32, #tpu.memory_space<vmem>>, %arg2: memref<128x16xf32, #tpu.memory_space<vmem>>, %arg3: memref<1x16xf32, #tpu.memory_space<vmem>>, %arg4: memref<16x128xf32, #tpu.memory_space<vmem>>, %arg5: memref<1x128xf32, #tpu.memory_space<vmem>>, %arg6: memref<2x128xf32, #tpu.memory_space<vmem>>) attributes {dimension_semantics = [#tpu.dimension_semantics<parallel>], iteration_bounds = array<i64: 1>, scalar_prefetch = 0 : i64, scratch_operands = 0 : i64, tpu.core_type = #tpu.core_type<tc>, window_params = [{transform_indices = @transform_0, window_bounds = array<i64: 2, 128>}, {pipeline_mode = #tpu.pipeline_mode<synchronous>, transform_indices = @transform_1, window_bounds = array<i64: 128, 16>}, {pipeline_mode = #tpu.pipeline_mode<synchronous>, transform_indices = @transform_2, window_bounds = array<i64: 1, 16>}, {pipeline_mode = #tpu.pipeline_mode<synchronous>, transform_indices = @transform_3, window_bounds = array<i64: 16, 128>}, {pipeline_mode = #tpu.pipeline_mode<synchronous>, transform_indices = @transform_4, window_bounds = array<i64: 1, 128>}, {transform_indices = @transform_5, window_bounds = array<i64: 2, 128>}]} {
    %c0 = arith.constant 0 : index
    %c0_0 = arith.constant 0 : index
    %0 = vector.load %arg1[%c0, %c0_0] : memref<2x128xf32, #tpu.memory_space<vmem>>, vector<2x128xf32>
    %c0_1 = arith.constant 0 : index
    %c0_2 = arith.constant 0 : index
    %1 = vector.load %arg2[%c0_1, %c0_2] : memref<128x16xf32, #tpu.memory_space<vmem>>, vector<128x16xf32>
    %cst = arith.constant dense<0.000000e+00> : vector<2x16xf32>
    %2 = tpu.matmul %0, %1, %cst {dimension_numbers = #tpu.dot_dimension_numbers<[1], [0], [0], [1], [0, 0, 1, 1], [], []>} : vector<2x128xf32>, vector<128x16xf32>, vector<2x16xf32> -> vector<2x16xf32>
    %c0_3 = arith.constant 0 : index
    %c0_4 = arith.constant 0 : index
    %3 = vector.load %arg3[%c0_3, %c0_4] : memref<1x16xf32, #tpu.memory_space<vmem>>, vector<1x16xf32>
    %4 = vector.broadcast %3 : vector<1x16xf32> to vector<2x16xf32>
    %5 = arith.addf %2, %4 : vector<2x16xf32>
    %cst_5 = arith.constant 0.000000e+00 : f32
    %6 = vector.broadcast %cst_5 : f32 to vector<2x16xf32>
    %7 = arith.maximumf %5, %6 : vector<2x16xf32>
    %c0_6 = arith.constant 0 : index
    %c0_7 = arith.constant 0 : index
    %8 = vector.load %arg4[%c0_6, %c0_7] : memref<16x128xf32, #tpu.memory_space<vmem>>, vector<16x128xf32>
    %cst_8 = arith.constant dense<0.000000e+00> : vector<2x128xf32>
    %9 = tpu.matmul %7, %8, %cst_8 {dimension_numbers = #tpu.dot_dimension_numbers<[1], [0], [0], [1], [0, 0, 1, 1], [], []>} : vector<2x16xf32>, vector<16x128xf32>, vector<2x128xf32> -> vector<2x128xf32>
    %c0_9 = arith.constant 0 : index
    %c0_10 = arith.constant 0 : index
    %10 = vector.load %arg5[%c0_9, %c0_10] : memref<1x128xf32, #tpu.memory_space<vmem>>, vector<1x128xf32>
    %11 = vector.broadcast %10 : vector<1x128xf32> to vector<2x128xf32>
    %12 = arith.addf %9, %11 : vector<2x128xf32>
    %13 = arith.negf %12 : vector<2x128xf32>
    %14 = math.exp %13 : vector<2x128xf32>
    %cst_11 = arith.constant 1.000000e+00 : f32
    %15 = vector.broadcast %cst_11 : f32 to vector<2x128xf32>
    %16 = arith.addf %15, %14 : vector<2x128xf32>
    %17 = arith.divf %15, %16 : vector<2x128xf32>
    %18 = arith.mulf %0, %17 : vector<2x128xf32>
    %c0_12 = arith.constant 0 : index
    %c0_13 = arith.constant 0 : index
    %19 = vector.load %arg6[%c0_12, %c0_13] : memref<2x128xf32, #tpu.memory_space<vmem>>, vector<2x128xf32>
    tpu.vector_store %arg6[%c0_12, %c0_13], %18 {strides = array<i32>} : memref<2x128xf32, #tpu.memory_space<vmem>>, vector<2x128xf32>,
    return
  }
  func.func @transform_0(%arg0: i32) -> (i32, i32) {
    %c0_i32 = arith.constant 0 : i32
    %c0_i32_0 = arith.constant 0 : i32
    return %arg0, %c0_i32 : i32, i32
  }
  func.func @transform_1(%arg0: i32) -> (i32, i32) {
    %c0_i32 = arith.constant 0 : i32
    %c0_i32_0 = arith.constant 0 : i32
    %c0_i32_1 = arith.constant 0 : i32
    return %c0_i32, %c0_i32_0 : i32, i32
  }
  func.func @transform_2(%arg0: i32) -> (i32, i32) {
    %c0_i32 = arith.constant 0 : i32
    %c0_i32_0 = arith.constant 0 : i32
    %c0_i32_1 = arith.constant 0 : i32
    return %c0_i32, %c0_i32_0 : i32, i32
  }
  func.func @transform_3(%arg0: i32) -> (i32, i32) {
    %c0_i32 = arith.constant 0 : i32
    %c0_i32_0 = arith.constant 0 : i32
    %c0_i32_1 = arith.constant 0 : i32
    return %c0_i32, %c0_i32_0 : i32, i32
  }
  func.func @transform_4(%arg0: i32) -> (i32, i32) {
    %c0_i32 = arith.constant 0 : i32
    %c0_i32_0 = arith.constant 0 : i32
    %c0_i32_1 = arith.constant 0 : i32
    return %c0_i32, %c0_i32_0 : i32, i32
  }
  func.func @transform_5(%arg0: i32) -> (i32, i32) {
    %c0_i32 = arith.constant 0 : i32
    %c0_i32_0 = arith.constant 0 : i32
    return %arg0, %c0_i32 : i32, i32
  }
}

</mosaic_0001>

<bundles_post_ra>
// kernel: tpu_custom_call.1
= control target key start
LH: loop header
LB: loop body
LE: loop exit
PB: predicated region body
PF: predicated region fallthrough
CT: control target
= control target key end

     0   :  { %v316_v1 = vmov 0.0   ;;  %vm317_vm0 = vmmov 0   ;;  %s415_s0 = inlined_call_operand.vmem [shape: f32[2,128], index: 0, kind: input, shape index: {}]   ;;  %s416_s1 = inlined_call_operand.vmem [shape: f32[128,16], index: 1, kind: input, shape index: {}]   ;;  %s417_s2 = inlined_call_operand.vmem [shape: f32[1,16], index: 2, kind: input, shape index: {}]   ;;  %s418_s3 = inlined_call_operand.vmem [shape: f32[16,128], index: 3, kind: input, shape index: {}]   ;;  %s419_s4 = inlined_call_operand.vmem [shape: f32[1,128], index: 4, kind: input, shape index: {}]   ;;  %s420_s5 = inlined_call_operand.hbm [shape: f32[2,128], index: 5, kind: output, shape index: {}]  }
   0x1   :  { %v37_v0 = vld [vmem:[%s416_s1 + $0x78] sm:$0xff]  ;;  %245 = vmatprep.subr.mxu0 %v316_v1  ;;  %v36_v2 = vld [vmem:[%s416_s1 + $0x70] sm:$0xff]  ;;  %277 = vmatprep.mubr.msk.f32.mxu0 %vm317_vm0, %v316_v1  ;;  %v35_v3 = vld [vmem:[%s416_s1 + $0x68] sm:$0xff] }
   0x2   :  { %246 = vmatpush3.msra.mxu0 %v37_v0  ;;  %280 = vmatprep.subr.mxu1 %v316_v1  ;;  %v34_v4 = vld [vmem:[%s416_s1 + $0x60] sm:$0xff] }
   0x3   :  { %247 = vmatprep.subr.mxu0 %v316_v1  ;;  %284 = vmatprep.mubr.msk.f32.mxu1 %vm317_vm0, %v316_v1 }
   0x4   :  { %248 = vmatpush3.msra.mxu0 %v36_v2 }
   0x5   :  { %249 = vmatprep.subr.mxu0 %v316_v1 }
   0x6   :  { %250 = vmatpush3.msra.mxu0 %v35_v3 }
   0x7   :  { %10 = vsyncpa [#allocation3], 0  ;;  %251 = vmatprep.subr.mxu0 %v316_v1  ;;  %v33_v5 = vld [vmem:[%s416_s1 + $0x58] sm:$0xff]  ;;  %v32_v6 = vld [vmem:[%s416_s1 + $0x50] sm:$0xff]  ;;  %vm125_vm1 = vcmask 130048  }
   0x8   :  { %252 = vmatpush3.msra.mxu0 %v34_v4  ;;  %v31_v7 = vld [vmem:[%s416_s1 + $0x48] sm:$0xff]  ;;  %v30_v8 = vld [vmem:[%s416_s1 + $0x40] sm:$0xff]  ;;  %v29_v9 = vld [vmem:[%s416_s1 + $0x38] sm:$0xff] }
   0x9   :  { %253 = vmatprep.subr.mxu0 %v316_v1  ;;  %v28_v10 = vld [vmem:[%s416_s1 + $0x30] sm:$0xff]  ;;  %v27_v11 = vld [vmem:[%s416_s1 + $0x28] sm:$0xff]  ;;  %v26_v12 = vld [vmem:[%s416_s1 + $0x20] sm:$0xff] }
   0xa   :  { %254 = vmatpush3.msra.mxu0 %v33_v5  ;;  %v25_v13 = vld [vmem:[%s416_s1 + $0x18] sm:$0xff]  ;;  %v24_v14 = vld [vmem:[%s416_s1 + $0x10] sm:$0xff]  ;;  %v23_v15 = vld [vmem:[%s416_s1 + $0x8] sm:$0xff] }
   0xb   :  { %255 = vmatprep.subr.mxu0 %v316_v1  ;;  %v22_v16 = vld [vmem:[%s416_s1] sm:$0xff]  ;;  %v117_v18 = vld [vmem:[%s418_s3 + $0x8] sm:$0xff] }
   0xc   :  { %256 = vmatpush3.msra.mxu0 %v32_v6  ;;  %v21_v17 = vld [vmem:[%s415_s0] sm:$0x3]  ;;  %281 = vmatpush3.msra.mxu1 %v117_v18 }
   0xd   :  { %257 = vmatprep.subr.mxu0 %v316_v1  ;;  %282 = vmatprep.subr.mxu1 %v316_v1  ;;  %v116_v19 = vld [vmem:[%s418_s3] sm:$0xff]  ;;  %s318_s3 = smov [#allocation2]  }
   0xe   :  { %258 = vmatpush3.msra.mxu0 %v31_v7  ;;  %283 = vmatpush3.msra.mxu1 %v116_v19  ;;  %v221_v20 = vld [vmem:[%s417_s2] ss:$0 sm:$0xff]  ;;  %s213_s2 = sshll.u32 %s318_s3, 4  ;;  %s214_s2 = int_to_ptr.vmem [resolvable:$true] %s213_s2 }
   0xf   :  { %259 = vmatprep.subr.mxu0 %v316_v1  ;;  %v222_v25 = vld [vmem:[%s419_s4] ss:$0 sm:$0xff]  ;;  %s294_s8 = scalar_lea.vmem %s214_s2, 32  ;;  %p299_p1 = scmp.lt.s32.totalorder %s214_s2, %s214_s2 }
  0x10   :  { %260 = vmatpush3.msra.mxu0 %v30_v8  ;;  %p295_p0 = scmp.ne.s32.totalorder %s214_s2, %s294_s8  ;;  %p300_p2 = scmp.lt.s32.totalorder %s294_s8, %s294_s8 }
  0x11   :  { %261 = vmatprep.subr.mxu0 %v316_v1 }
  0x12   :  { %262 = vmatpush3.msra.mxu0 %v29_v9  ;;  %p301_p3 = por %p300_p2, %p299_p1 }
  0x13   :  { %263 = vmatprep.subr.mxu0 %v316_v1 }
  0x14   :  { %264 = vmatpush3.msra.mxu0 %v28_v10  ;;  %p302_p4 = pnand %p301_p3, %p295_p0 }
  0x15   :  { %265 = vmatprep.subr.mxu0 %v316_v1 }
  0x16   :  { %266 = vmatpush3.msra.mxu0 %v27_v11 }
  0x17   :  { %267 = vmatprep.subr.mxu0 %v316_v1 }
  0x18   :  { %268 = vmatpush3.msra.mxu0 %v26_v12 }
  0x19   :  { %269 = vmatprep.subr.mxu0 %v316_v1 }
  0x1a   :  { %270 = vmatpush3.msra.mxu0 %v25_v13 }
  0x1b   :  { %271 = vmatprep.subr.mxu0 %v316_v1 }
  0x1c   :  { %272 = vmatpush3.msra.mxu0 %v24_v14 }
  0x1d   :  { %273 = vmatprep.subr.mxu0 %v316_v1 }
  0x1e   :  { %274 = vmatpush3.msra.mxu0 %v23_v15 }
  0x1f   :  { %275 = vmatprep.subr.mxu0 %v316_v1 }
  0x20   :  { %276 = vmatpush3.msra.mxu0 %v22_v16 }
  0x21   :  { %278 = vmatmul.mubr.f32.vlgmr.msra.gmra.mxu0 %v21_v17 }
  0xe1   :  { %v111_v21 = vpop.f32.mrf.mxu0 }
  0xe2   :  { %v112_v22 = vadd.f32 %v221_v20, %v111_v21 }
  0xe3   :  { %v279_v23 = vpop.f32.mrf.mxu0 }
  0xe4   :  { %v115_v24 = vmax.f32 %v112_v22, 0.0 }
  0xe6   :  { %285 = vmatmul.mubr.msk.f32.vlgmr.msra.gmra.mxu1 %vm125_vm1, %v115_v24 }
 0x1a6   :  { %v195_v26 = vpop.f32.mrf.mxu1 }
 0x1a7   :  { %v196_v27 = vadd.f32 %v222_v25, %v195_v26 }
 0x1a8   :  { %v286_v28 = vpop.f32.mrf.mxu1 }
 0x1a9   :  { %v224_v29 = vmul.f32 -1.442695, %v196_v27 }
 0x1ab   :  { %290 = vpow2.f32 %v224_v29 }
 0x1b8   :  { %v291_v30 = vpop.eup %290 }
 0x1b9   :  { %v202_v31 = vadd.f32 1.0, %v291_v30 }
 0x1bb   :  { %292 = vrcp.f32 %v202_v31 }
 0x1c8   :  { %v293_v32 = vpop.eup %292 }
 0x1c9   :  { %v205_v33 = vmul.f32 %v293_v32, %v21_v17 }
 0x1cb   :  { %206 = vst [vmem:[#allocation2] sm:$0x3] %v205_v33 }
 0x1cc   :  { %305 = shalt.err (!%p302_p4)
}
 0x1cd   :  { %216 = dma.vmem_to_hbm [thread:$0]  %s214_s2, 32, %s420_s5, [#allocation3]  }
 0x1ce   :  { %314 = dma.done.wait [#allocation3], 32  }
 0x1cf   :  { %315 = vsyncadd [#allocation3], 4294967264 }
 0x1d0   :  { %220 = vsyncpa [#allocation3], 1 }

</bundles_post_ra>
